<compile_context>
chip_gen: v5e
topology: v5e:2x2
jax: 0.10.0
libtpu: 0.0.40
codegen_flags: <defaults>
</compile_context>

<pallas_src>
import jax
import jax.numpy as jnp
from jax.experimental import pallas as pl
from jax.experimental.pallas import tpu as pltpu


_SPLIT_THRESHOLD_BYTES = 4 * 1024 * 1024  # don't bother splitting small copies
_MAX_CONCURRENT_COPIES = 8


def _make_identity_copy_kernel(num_copies, chunk):
    """Build an HBM->HBM copy kernel issuing `num_copies` concurrent DMAs."""

    def kernel(x_hbm, o_hbm, sems):
        if num_copies == 1:
            cp = pltpu.make_async_copy(x_hbm, o_hbm, sems.at[0])
            cp.start()
            cp.wait()
            return
        # Split along the leading dim into `num_copies` contiguous chunks so
        # multiple DMA descriptors are in flight at once (hides per-descriptor
        # issue latency on multi-hundred-MiB tensors).  Chunks stay flat and
        # contiguous — no VMEM staging is ever introduced.
        copies = []
        for i in range(num_copies):
            sl = pl.ds(i * chunk, chunk)
            copies.append(
                pltpu.make_async_copy(x_hbm.at[sl], o_hbm.at[sl], sems.at[i])
            )
        for cp in copies:
            cp.start()
        for cp in copies:
            cp.wait()

    return kernel


def transform_layer_forward(hidden_states, params=None, materialize=False):
    """Reproduces TransformLayer.forward exactly (identity).

    `params` (transform weight/bias, layer_norm gamma/beta) are accepted for
    interface fidelity but — matching the reference forward() — are not used.

    By default this returns the input directly (zero-cost identity).  Pass
    `materialize=True` only if a physically distinct output buffer is needed;
    that path runs a single Pallas kernel doing flat HBM->HBM DMA copies.
    """
    del params
    if not materialize:
        # Fast path: exact identity, zero HBM traffic, zero launch overhead.
        return hidden_states

    shape = hidden_states.shape
    dtype = hidden_states.dtype
    nbytes = int(hidden_states.size) * int(dtype.itemsize)

    num_copies = 1
    chunk = shape[0] if len(shape) > 0 else 1
    if len(shape) > 0 and nbytes >= _SPLIT_THRESHOLD_BYTES and shape[0] > 1:
        lead = shape[0]
        for k in range(min(lead, _MAX_CONCURRENT_COPIES), 1, -1):
            if lead % k == 0:
                num_copies = k
                chunk = lead // k
                break

    kernel = _make_identity_copy_kernel(num_copies, chunk)
    return pl.pallas_call(
        kernel,
        out_shape=jax.ShapeDtypeStruct(shape, dtype),
        # Leave both operands in HBM; the kernel issues the copies itself.
        in_specs=[pl.BlockSpec(memory_space=pl.ANY)],
        out_specs=pl.BlockSpec(memory_space=pl.ANY),
        scratch_shapes=[pltpu.SemaphoreType.DMA((num_copies,))],
    )(hidden_states)


def init_transform_layer_params(key, embed_dim, dtype=jnp.float32):
    """Deterministic parameter init matching nn.Linear + nn.LayerNorm shapes."""
    k_w, k_b = jax.random.split(key)
    bound = 1.0 / jnp.sqrt(embed_dim)
    return {
        "transform_weight": jax.random.uniform(
            k_w, (embed_dim, embed_dim), dtype, -bound, bound
        ),
        "transform_bias": jax.random.uniform(
            k_b, (embed_dim,), dtype, -bound, bound
        ),
        "layer_norm_gamma": jnp.ones((embed_dim,), dtype),
        "layer_norm_beta": jnp.zeros((embed_dim,), dtype),
        "layer_norm_eps": 1e-05,
    }


if __name__ == "__main__":
    key = jax.random.PRNGKey(0)
    k_x, k_p = jax.random.split(key)

    batch, seq, embed_dim = 2, 8, 32
    hidden_states = jax.random.normal(k_x, (batch, seq, embed_dim), jnp.float32)
    params = init_transform_layer_params(k_p, embed_dim)

    # Default (optimal) path: pure identity, no kernel launch.
    out_fast = transform_layer_forward(hidden_states, params)
    out_fast = jax.block_until_ready(out_fast)
    assert out_fast.shape == hidden_states.shape
    assert out_fast.dtype == hidden_states.dtype
    assert bool(jnp.all(out_fast == hidden_states))

    # Materializing path: exercises the Pallas HBM->HBM copy kernel.
    out_copy = transform_layer_forward(hidden_states, params, materialize=True)
    out_copy = jax.block_until_ready(out_copy)
    assert out_copy.shape == hidden_states.shape
    assert out_copy.dtype == hidden_states.dtype
    assert bool(jnp.all(out_copy == hidden_states))

    print("KERNEL_OK")
</pallas_src>

<mosaic_0001>
module attributes {stable_mosaic.version = 11 : i64} {
  func.func @kernel(%arg0: memref<2x8x32xf32, #tpu.memory_space<any>>, %arg1: memref<2x8x32xf32, #tpu.memory_space<any>>, %arg2: memref<1x!tpu.dma_semaphore, #tpu.memory_space<semaphore_mem>>) attributes {dimension_semantics = [], scalar_prefetch = 0 : i64, scratch_operands = 1 : i64, tpu.core_type = #tpu.core_type<tc>} {
    %c0_i32 = arith.constant 0 : i32
    %0 = tpu.memref_slice %arg2[%c0_i32] : memref<1x!tpu.dma_semaphore, #tpu.memory_space<semaphore_mem>> -> memref<1x!tpu.dma_semaphore, #tpu.memory_space<semaphore_mem>>
    %1 = tpu.memref_squeeze %0 : memref<1x!tpu.dma_semaphore, #tpu.memory_space<semaphore_mem>> -> memref<!tpu.dma_semaphore, #tpu.memory_space<semaphore_mem>>
    tpu.enqueue_dma source(%arg0 : memref<2x8x32xf32, #tpu.memory_space<any>>) target(%arg1 : memref<2x8x32xf32, #tpu.memory_space<any>>) target_semaphore(%1 : memref<!tpu.dma_semaphore, #tpu.memory_space<semaphore_mem>>)
    %c0_i32_0 = arith.constant 0 : i32
    %2 = tpu.memref_slice %arg2[%c0_i32_0] : memref<1x!tpu.dma_semaphore, #tpu.memory_space<semaphore_mem>> -> memref<1x!tpu.dma_semaphore, #tpu.memory_space<semaphore_mem>>
    %3 = tpu.memref_squeeze %2 : memref<1x!tpu.dma_semaphore, #tpu.memory_space<semaphore_mem>> -> memref<!tpu.dma_semaphore, #tpu.memory_space<semaphore_mem>>
    tpu.wait_dma2 semaphore(%3 : memref<!tpu.dma_semaphore, #tpu.memory_space<semaphore_mem>>) src(%arg0 : memref<2x8x32xf32, #tpu.memory_space<any>>) dst(%arg1 : memref<2x8x32xf32, #tpu.memory_space<any>>)
    return
  }
}

</mosaic_0001>

<bundles_post_ra>
// kernel: tpu_custom_call.1
= control target key start
LH: loop header
LB: loop body
LE: loop exit
PB: predicated region body
PF: predicated region fallthrough
CT: control target
= control target key end

     0   :  { %s33_s12 = smov [#allocation2]   ;;  %s34_s13 = smov [#allocation3]   ;;  %s52_s0 = inlined_call_operand.hbm [shape: f32[2,8,32], index: 0, kind: input, shape index: {}]   ;;  %s53_s1 = inlined_call_operand.hbm [shape: f32[2,8,32], index: 1, kind: output, shape index: {}]  }
   0x1   :  { %s10_s8 = sshll.u32 %s52_s0, 4  ;;  %s12_s11 = sshll.u32 %s53_s1, 4  ;;  %s11_s8 = int_to_ptr.hbm [resolvable:$true] %s10_s8  ;;  %s13_s11 = int_to_ptr.hbm [resolvable:$true] %s12_s11 }
   0x2   :  { %s35_s14 = smov 0  }
   0x3   :  { %16 = dma.general %s11_s8, 256, %s13_s11, %s33_s12, %s34_s13, [#allocation4], %s35_s14, 0  }
   0x4   :  { %31 = dma.done.wait [#allocation2], 256 }
   0x5   :  { %32 = vsyncadd [#allocation2], 4294967040 }
   0x6   :  { %21 = vsyncmov [#allocation2] }
   0x9   :  { %s22_s15 = vpop.sfrf %21 }
   0xa   :  { %p27_p0 = scmp.ne.s32.totalorder %s22_s15, 0 }
   0xc   :  { %26 = shalt.err (%p27_p0)  }

</bundles_post_ra>
